<compile_context>
chip_gen: v7x
topology: tpu7x:2x2x1
jax: 0.10.0
libtpu: 0.0.40
codegen_flags: <defaults>
</compile_context>

<pallas_src>
import jax
import jax.numpy as jnp
from jax.experimental import pallas as pl
from jax.experimental.pallas import tpu as pltpu

# ----------------------------- problem sizes --------------------------------
SIZE_DICT = 16                      # stand-in for len(label_dict) (no file I/O)
D_FIRST = 384                       # input_size - size_dict
D_LAST = SIZE_DICT
D_TOTAL = D_FIRST + D_LAST          # 400
FINAL = 1                           # final_size


def _round_up(a, b):
    return (a + b - 1) // b * b


# ------------------------------- kernel -------------------------------------
def model_kernel(x_ref, wc_ref, s_ref, o_ref):
    # x_ref : (tn, D_TOTAL) tile of input rows (VMEM).
    # wc_ref: (D_TOTAL, 2)  fused [W1 | W2] weight, zero padded (VMEM, resident).
    # s_ref : (5,) SMEM scalars = [b1, b2, w3_a, w3_b, b3].
    # o_ref : (tn, FINAL)   output tile.
    y12 = jnp.dot(x_ref[...], wc_ref[...],
                  preferred_element_type=jnp.float32)          # (tn, 2) on MXU

    # Branch biases + ReLU (VPU, scalars broadcast from SMEM).
    y1 = jnp.maximum(y12[:, 0:1] + s_ref[0], 0.0)              # fc1_first branch
    y2 = jnp.maximum(y12[:, 1:2] + s_ref[1], 0.0)              # fc2_last branch

    # fc3_combined on cat([y1, y2]) == w3_a*y1 + w3_b*y2 + b3  (scalar VPU math)
    y3 = jnp.maximum(s_ref[2] * y1 + s_ref[3] * y2 + s_ref[4], 0.0)

    o_ref[...] = y3.astype(o_ref.dtype)


# ------------------------------- wrapper -------------------------------------
def model_forward(x, params, *, tn=1024):
    """x: (N, D_TOTAL) float32. Returns (N,) float32 (matches squeeze(1))."""
    N, D = x.shape
    assert D == D_TOTAL
    w1, b1, w2, b2, w3, b3 = params

    # Fused branch weight: column 0 = fc1_first over the first 384 features,
    # column 1 = fc2_last over the last 16 features, zeros elsewhere.
    wc = jnp.zeros((D_TOTAL, 2), jnp.float32)
    wc = wc.at[:D_FIRST, 0].set(w1[0, :].astype(jnp.float32))
    wc = wc.at[D_FIRST:, 1].set(w2[0, :].astype(jnp.float32))

    # fc3 weights + all biases as five SMEM scalars: [b1, b2, w3_a, w3_b, b3].
    scal = jnp.stack([b1[0], b2[0], w3[0, 0], w3[0, 1], b3[0]]).astype(jnp.float32)

    # Row tile: large enough to amortize per-step overhead / saturate HBM, never
    # larger than the (8-row padded) batch.  At tn=1024 the double-buffered x
    # tile is ~4 MiB, comfortably inside default scoped VMEM on v5e/v6e/v7x.
    tn = int(max(8, min(tn, _round_up(N, 8))))
    n_pad = _round_up(N, tn)
    if n_pad != N:
        x = jnp.pad(x, ((0, n_pad - N), (0, 0)))

    out2d = pl.pallas_call(
        model_kernel,
        out_shape=jax.ShapeDtypeStruct((n_pad, FINAL), jnp.float32),
        grid_spec=pltpu.PrefetchScalarGridSpec(
            num_scalar_prefetch=0,
            grid=(n_pad // tn,),
            in_specs=[
                pl.BlockSpec((tn, D_TOTAL), lambda i: (i, 0)),        # x rows
                pl.BlockSpec((D_TOTAL, 2), lambda i: (0, 0)),         # fused W
                pl.BlockSpec(memory_space=pltpu.MemorySpace.SMEM),    # scalars
            ],
            out_specs=pl.BlockSpec((tn, FINAL), lambda i: (i, 0)),
        ),
        compiler_params=pltpu.CompilerParams(
            dimension_semantics=("parallel",)),
    )(x, wc, scal)

    return out2d[:N, 0]                                  # squeeze(1)


# --------------------------- deterministic params ----------------------------
def init_params(key):
    """PyTorch nn.Linear default init: U(-1/sqrt(fan_in), +1/sqrt(fan_in))."""
    ks = jax.random.split(key, 6)

    def linear(kw, kb, fan_in, fan_out):
        bound = 1.0 / jnp.sqrt(fan_in)
        w = jax.random.uniform(kw, (fan_out, fan_in), jnp.float32, -bound, bound)
        b = jax.random.uniform(kb, (fan_out,), jnp.float32, -bound, bound)
        return w, b

    w1, b1 = linear(ks[0], ks[1], D_FIRST, FINAL)        # fc1_first
    w2, b2 = linear(ks[2], ks[3], D_LAST, FINAL)         # fc2_last
    w3, b3 = linear(ks[4], ks[5], 2 * FINAL, FINAL)      # fc3_combined
    return (w1, b1, w2, b2, w3, b3)


def reference_forward(x, params):
    w1, b1, w2, b2, w3, b3 = params
    xf = x[:, :D_FIRST]
    xl = x[:, -D_LAST:]
    y1 = jnp.maximum(xf @ w1.T + b1, 0.0)
    y2 = jnp.maximum(xl @ w2.T + b2, 0.0)
    yc = jnp.concatenate([y1, y2], axis=1)
    y3 = jnp.maximum(yc @ w3.T + b3, 0.0)
    return y3[:, 0]


# ---------------------------------- main -------------------------------------
if __name__ == "__main__":
    key = jax.random.PRNGKey(0)
    k_param, k_x = jax.random.split(key)

    params = init_params(k_param)
    x = jax.random.normal(k_x, (16, D_TOTAL), jnp.float32)   # N=16 rows

    out = jax.block_until_ready(model_forward(x, params))

    ref = reference_forward(x, params)
    assert out.shape == (16,)
    assert jnp.allclose(out, ref, atol=1e-5, rtol=1e-5), "mismatch vs reference"

    print("KERNEL_OK")
</pallas_src>

<mosaic_0001>
module attributes {stable_mosaic.version = 11 : i64} {
  func.func @model_kernel(%arg0: i32, %arg1: memref<16x400xf32, #tpu.memory_space<vmem>>, %arg2: memref<400x2xf32, #tpu.memory_space<vmem>>, %arg3: memref<5xf32, #tpu.memory_space<smem>>, %arg4: memref<16x1xf32, #tpu.memory_space<vmem>>) attributes {dimension_semantics = [#tpu.dimension_semantics<parallel>], iteration_bounds = array<i64: 1>, scalar_prefetch = 0 : i64, scratch_operands = 0 : i64, tpu.core_type = #tpu.core_type<tc>, window_params = [{transform_indices = @transform_0, window_bounds = array<i64: 16, 400>}, {pipeline_mode = #tpu.pipeline_mode<synchronous>, transform_indices = @transform_1, window_bounds = array<i64: 400, 2>}, {transform_indices = @transform_2, window_bounds = array<i64: 5>}, {transform_indices = @transform_3, window_bounds = array<i64: 16, 1>}]} {
    %c0 = arith.constant 0 : index
    %c0_0 = arith.constant 0 : index
    %0 = vector.load %arg1[%c0, %c0_0] : memref<16x400xf32, #tpu.memory_space<vmem>>, vector<16x400xf32>
    %c0_1 = arith.constant 0 : index
    %c0_2 = arith.constant 0 : index
    %1 = vector.load %arg2[%c0_1, %c0_2] : memref<400x2xf32, #tpu.memory_space<vmem>>, vector<400x2xf32>
    %cst = arith.constant dense<0.000000e+00> : vector<16x2xf32>
    %2 = tpu.matmul %0, %1, %cst {dimension_numbers = #tpu.dot_dimension_numbers<[1], [0], [0], [1], [0, 0, 1, 1], [], []>} : vector<16x400xf32>, vector<400x2xf32>, vector<16x2xf32> -> vector<16x2xf32>
    %3 = vector.extract_strided_slice %2 {offsets = [0, 0], sizes = [16, 1], strides = [1, 1]} : vector<16x2xf32> to vector<16x1xf32>
    %c0_3 = arith.constant 0 : index
    %4 = memref.load %arg3[%c0_3] : memref<5xf32, #tpu.memory_space<smem>>
    %5 = vector.broadcast %4 : f32 to vector<16x1xf32>
    %6 = arith.addf %3, %5 : vector<16x1xf32>
    %cst_4 = arith.constant 0.000000e+00 : f32
    %7 = vector.broadcast %cst_4 : f32 to vector<16x1xf32>
    %8 = arith.maximumf %6, %7 : vector<16x1xf32>
    %9 = vector.extract_strided_slice %2 {offsets = [0, 1], sizes = [16, 1], strides = [1, 1]} : vector<16x2xf32> to vector<16x1xf32>
    %c1 = arith.constant 1 : index
    %10 = memref.load %arg3[%c1] : memref<5xf32, #tpu.memory_space<smem>>
    %11 = vector.broadcast %10 : f32 to vector<16x1xf32>
    %12 = arith.addf %9, %11 : vector<16x1xf32>
    %cst_5 = arith.constant 0.000000e+00 : f32
    %13 = vector.broadcast %cst_5 : f32 to vector<16x1xf32>
    %14 = arith.maximumf %12, %13 : vector<16x1xf32>
    %c2 = arith.constant 2 : index
    %15 = memref.load %arg3[%c2] : memref<5xf32, #tpu.memory_space<smem>>
    %16 = vector.broadcast %15 : f32 to vector<16x1xf32>
    %17 = arith.mulf %16, %8 : vector<16x1xf32>
    %c3 = arith.constant 3 : index
    %18 = memref.load %arg3[%c3] : memref<5xf32, #tpu.memory_space<smem>>
    %19 = vector.broadcast %18 : f32 to vector<16x1xf32>
    %20 = arith.mulf %19, %14 : vector<16x1xf32>
    %21 = arith.addf %17, %20 : vector<16x1xf32>
    %c4 = arith.constant 4 : index
    %22 = memref.load %arg3[%c4] : memref<5xf32, #tpu.memory_space<smem>>
    %23 = vector.broadcast %22 : f32 to vector<16x1xf32>
    %24 = arith.addf %21, %23 : vector<16x1xf32>
    %cst_6 = arith.constant 0.000000e+00 : f32
    %25 = vector.broadcast %cst_6 : f32 to vector<16x1xf32>
    %26 = arith.maximumf %24, %25 : vector<16x1xf32>
    %c0_7 = arith.constant 0 : index
    %c0_8 = arith.constant 0 : index
    %27 = vector.load %arg4[%c0_7, %c0_8] : memref<16x1xf32, #tpu.memory_space<vmem>>, vector<16x1xf32>
    tpu.vector_store %arg4[%c0_7, %c0_8], %26 {strides = array<i32>} : memref<16x1xf32, #tpu.memory_space<vmem>>, vector<16x1xf32>,
    return
  }
  func.func @transform_0(%arg0: i32) -> (i32, i32) {
    %c0_i32 = arith.constant 0 : i32
    %c0_i32_0 = arith.constant 0 : i32
    return %arg0, %c0_i32 : i32, i32
  }
  func.func @transform_1(%arg0: i32) -> (i32, i32) {
    %c0_i32 = arith.constant 0 : i32
    %c0_i32_0 = arith.constant 0 : i32
    %c0_i32_1 = arith.constant 0 : i32
    return %c0_i32, %c0_i32_0 : i32, i32
  }
  func.func @transform_2(%arg0: i32) -> i32 {
    %c0_i32 = arith.constant 0 : i32
    %c0_i32_0 = arith.constant 0 : i32
    return %c0_i32 : i32
  }
  func.func @transform_3(%arg0: i32) -> (i32, i32) {
    %c0_i32 = arith.constant 0 : i32
    %c0_i32_0 = arith.constant 0 : i32
    return %arg0, %c0_i32 : i32, i32
  }
}

</mosaic_0001>

<bundles_post_ra>
// kernel: tpu_custom_call.1
= control target key start
LH: loop header
LB: loop body
LE: loop exit
PB: predicated region body
PF: predicated region fallthrough
CT: control target
= control target key end

     0   :  { %8 = vsyncpa [#allocation3], 0  ;;  %s623_s0 = inlined_call_operand.vmem [shape: f32[16,400], index: 0, kind: input, shape index: {}]   ;;  %s624_s1 = inlined_call_operand.vmem [shape: f32[400,2], index: 1, kind: input, shape index: {}]   ;;  %s625_s2 = inlined_call_operand.vmem [shape: f32[5], index: 2, kind: input, shape index: {}]   ;;  %s626_s3 = inlined_call_operand.vmem [shape: f32[16,1], index: 3, kind: output, shape index: {}]  }
   0x1   :  { %s19_s14 = sshll.u32 %s625_s2, 4  ;;  %s20_s14 = int_to_ptr.vmem [resolvable:$true] %s19_s14 }
   0x2   :  { %s392_s15 = scalar_lea.vmem %s20_s14, 16  ;;  %p397_p1 = scmp.lt.s32.totalorder %s20_s14, %s20_s14 }
   0x3   :  { %p393_p0 = scmp.ne.s32.totalorder %s20_s14, %s392_s15  ;;  %p398_p2 = scmp.lt.s32.totalorder %s392_s15, %s392_s15 }
   0x5   :  { %p399_p3 = por %p398_p2, %p397_p1 }
   0x7   :  { %p400_p4 = pnand %p399_p3, %p393_p0 }
   0x9   :  { %403 = shalt.err (!%p400_p4)
}
   0xa   :  { %s406_s16 = smov [#allocation2]  }
   0xb   :  { %22 = dma.vmem_to_smem %s20_s14, 16, %s406_s16, [#allocation3]  }
   0xc   :  { %404 = dma.done.wait [#allocation3], 16  }
   0xd   :  { %405 = vsyncadd [#allocation3], 4294967280 }
   0xe   :  { %26 = sfence }
   0xf   :  { %v51_v0 = vld [vmem:[%s624_s1 + $0x80] sm:$0xff]  ;;  %v52_v1 = vld [vmem:[%s624_s1 + $0x88] sm:$0xff]  ;;  %v407_v3 = vmov 0.0|0.0   ;;  %v53_v10 = vld [vmem:[%s624_s1 + $0x90] sm:$0xff]  ;;  %vm85_vm0 = vcmask 130048   ;;  %s288_s20 = sld [smem:[#allocation2 + $0x1]] }
  0x10   :  { %v67_v2 = vld [vmem:[%s624_s1 + $0x100] sm:$0xff]  ;;  %362 = vmatprep.subr.bf16.mxu1 %v407_v3  ;;  %v330_v4 = vpack.c.bf16 %v52_v1, %v51_v0  ;;  %v68_v5 = vld [vmem:[%s624_s1 + $0x108] sm:$0xff]  ;;  %v54_v11 = vld [vmem:[%s624_s1 + $0x98] sm:$0xff]  ;;  %s290_s2 = sld [smem:[#allocation2 + $0x3]]  ;;  %s242_s21 = sld [smem:[#allocation2]]  ;;  %vm278_vm1 = vcmask 7168  }
  0x11   :  { %v35_v6 = vld [vmem:[%s624_s1] sm:$0xff]  ;;  %v36_v7 = vld [vmem:[%s624_s1 + $0x8] sm:$0xff]  ;;  %v363_v8 = vpack.c.bf16 %v68_v5, %v67_v2  ;;  %v69_v12 = vld [vmem:[%s624_s1 + $0x110] sm:$0xff]  ;;  %v334_v13 = vpack.c.bf16 %v54_v11, %v53_v10  ;;  %s289_s22 = sld [smem:[#allocation2 + $0x2]]  ;;  %s291_s23 = sld [smem:[#allocation2 + $0x4]] }
  0x12   :  { %v332_v9 = vpack.c.bf16 %v36_v7, %v35_v6  ;;  %331 = vmatprep.subr.bf16.mxu0 %v330_v4  ;;  %v70_v14 = vld [vmem:[%s624_s1 + $0x118] sm:$0xff]  ;;  %v37_v15 = vld [vmem:[%s624_s1 + $0x10] sm:$0xff]  ;;  %v55_v19 = vld [vmem:[%s624_s1 + $0xa0] sm:$0xff] }
  0x13   :  { %v38_v16 = vld [vmem:[%s624_s1 + $0x18] sm:$0xff]  ;;  %364 = vmatpush1.bf16.msra.mxu1 %v363_v8  ;;  %v366_v17 = vpack.c.bf16 %v70_v14, %v69_v12  ;;  %v56_v20 = vld [vmem:[%s624_s1 + $0xa8] sm:$0xff]  ;;  %v71_v21 = vld [vmem:[%s624_s1 + $0x120] sm:$0xff] }
  0x14   :  { %333 = vmatpush3.bf16.msra.mxu0 %v332_v9  ;;  %v336_v18 = vpack.c.bf16 %v38_v16, %v37_v15  ;;  %365 = vmatprep.subr.bf16.mxu1 %v407_v3  ;;  %v338_v22 = vpack.c.bf16 %v56_v20, %v55_v19  ;;  %v72_v23 = vld [vmem:[%s624_s1 + $0x128] sm:$0xff]  ;;  %v39_v24 = vld [vmem:[%s624_s1 + $0x20] sm:$0xff]  ;;  %v57_v26 = vld [vmem:[%s624_s1 + $0xb0] sm:$0xff] }
  0x15   :  { %335 = vmatprep.subr.bf16.mxu0 %v334_v13  ;;  %v40_v25 = vld [vmem:[%s624_s1 + $0x28] sm:$0xff]  ;;  %v58_v27 = vld [vmem:[%s624_s1 + $0xb8] sm:$0xff]  ;;  %v369_v28 = vpack.c.bf16 %v72_v23, %v71_v21  ;;  %v73_v30 = vld [vmem:[%s624_s1 + $0x130] sm:$0xff] }
  0x16   :  { %v340_v29 = vpack.c.bf16 %v40_v25, %v39_v24  ;;  %v342_v31 = vpack.c.bf16 %v58_v27, %v57_v26  ;;  %v74_v32 = vld [vmem:[%s624_s1 + $0x138] sm:$0xff]  ;;  %v41_v33 = vld [vmem:[%s624_s1 + $0x30] sm:$0xff]  ;;  %v59_v35 = vld [vmem:[%s624_s1 + $0xc0] sm:$0xff]  ;;  %v249_v24 = vstv %s288_s20 }
  0x17   :  { %367 = vmatpush1.bf16.msra.mxu1 %v366_v17  ;;  %v42_v34 = vld [vmem:[%s624_s1 + $0x38] sm:$0xff]  ;;  %v60_v36 = vld [vmem:[%s624_s1 + $0xc8] sm:$0xff]  ;;  %v372_v37 = vpack.c.bf16 %v74_v32, %v73_v30  ;;  %v75_v39 = vld [vmem:[%s624_s1 + $0x140] sm:$0xff]  ;;  %v259_v32 = vstv %s290_s2 }
  0x18   :  { %337 = vmatpush3.bf16.msra.mxu0 %v336_v18  ;;  %368 = vmatprep.subr.bf16.mxu1 %v407_v3  ;;  %v344_v38 = vpack.c.bf16 %v42_v34, %v41_v33  ;;  %v346_v40 = vpack.c.bf16 %v60_v36, %v59_v35  ;;  %v76_v41 = vld [vmem:[%s624_s1 + $0x148] sm:$0xff]  ;;  %v43_v42 = vld [vmem:[%s624_s1 + $0x40] sm:$0xff]  ;;  %v61_v44 = vld [vmem:[%s624_s1 + $0xd0] sm:$0xff] }
  0x19   :  { %339 = vmatprep.subr.bf16.mxu0 %v338_v22  ;;  %v44_v43 = vld [vmem:[%s624_s1 + $0x48] sm:$0xff]  ;;  %v62_v45 = vld [vmem:[%s624_s1 + $0xd8] sm:$0xff]  ;;  %v375_v46 = vpack.c.bf16 %v76_v41, %v75_v39  ;;  %v77_v48 = vld [vmem:[%s624_s1 + $0x150] sm:$0xff] }
  0x1a   :  { %v348_v47 = vpack.c.bf16 %v44_v43, %v43_v42  ;;  %v78_v49 = vld [vmem:[%s624_s1 + $0x158] sm:$0xff]  ;;  %v28_v50 = vld [vmem:[%s623_s0 + $0x8] sm:$0xff]  ;;  %v350_v51 = vpack.c.bf16 %v62_v45, %v61_v44  ;;  %v45_v52 = vld [vmem:[%s624_s1 + $0x50] sm:$0xff]  ;;  %v255_v44 = vstv %s289_s22 }
  0x1b   :  { %370 = vmatpush1.bf16.msra.mxu1 %v369_v28  ;;  %v46_v53 = vld [vmem:[%s624_s1 + $0x58] sm:$0xff]  ;;  %v63_v55 = vld [vmem:[%s624_s1 + $0xe0] sm:$0xff]  ;;  %v64_v56 = vld [vmem:[%s624_s1 + $0xe8] sm:$0xff]  ;;  %156 = vmatprep.mubr.f32.mxu0 %v28_v50  ;;  %v378_v57 = vpack.c.bf16 %v78_v49, %v77_v48 }
  0x1c   :  { %341 = vmatpush3.bf16.msra.mxu0 %v340_v29  ;;  %371 = vmatprep.subr.bf16.mxu1 %v407_v3  ;;  %v30_v54 = vld [vmem:[%s623_s0 + $0x18] sm:$0xff]  ;;  %v352_v58 = vpack.c.bf16 %v46_v53, %v45_v52  ;;  %v79_v59 = vld [vmem:[%s624_s1 + $0x160] sm:$0xff]  ;;  %v354_v60 = vpack.c.bf16 %v64_v56, %v63_v55  ;;  %v80_v61 = vld [vmem:[%s624_s1 + $0x168] sm:$0xff] }
  0x1d   :  { %343 = vmatprep.subr.bf16.mxu0 %v342_v31  ;;  %286 = vmatprep.mubr.msk.f32.mxu1 %vm85_vm0, %v30_v54  ;;  %v47_v62 = vld [vmem:[%s624_s1 + $0x60] sm:$0xff]  ;;  %v48_v63 = vld [vmem:[%s624_s1 + $0x68] sm:$0xff]  ;;  %v65_v0 = vld [vmem:[%s624_s1 + $0xf0] sm:$0xff]  ;;  %v381_v2 = vpack.c.bf16 %v80_v61, %v79_v59 }
  0x1e   :  { %v66_v1 = vld [vmem:[%s624_s1 + $0xf8] sm:$0xff]  ;;  %v356_v4 = vpack.c.bf16 %v48_v63, %v47_v62  ;;  %v81_v5 = vld [vmem:[%s624_s1 + $0x170] sm:$0xff]  ;;  %v83_v12 = vld [vmem:[%s624_s1 + $0x180] sm:$0xff] }
  0x1f   :  { %373 = vmatpush1.bf16.msra.mxu1 %v372_v37  ;;  %v358_v6 = vpack.c.bf16 %v66_v1, %v65_v0  ;;  %v82_v7 = vld [vmem:[%s624_s1 + $0x178] sm:$0xff]  ;;  %v49_v8 = vld [vmem:[%s624_s1 + $0x70] sm:$0xff]  ;;  %v84_v13 = vld [vmem:[%s624_s1 + $0x188] sm:$0xff] }
  0x20   :  { %345 = vmatpush3.bf16.msra.mxu0 %v344_v38  ;;  %374 = vmatprep.subr.bf16.mxu1 %v407_v3  ;;  %v50_v9 = vld [vmem:[%s624_s1 + $0x78] sm:$0xff]  ;;  %v384_v10 = vpack.c.bf16 %v82_v7, %v81_v5  ;;  %v27_v14 = vld [vmem:[%s623_s0] sm:$0xff]  ;;  %v387_v15 = vpack.c.bf16 %v84_v13, %v83_v12  ;;  %v32_v16 = vld [vmem:[%s623_s0 + $0x28] sm:$0xff] }
  0x21   :  { %347 = vmatprep.subr.bf16.mxu0 %v346_v40  ;;  %v360_v11 = vpack.c.bf16 %v50_v9, %v49_v8  ;;  %v29_v17 = vld [vmem:[%s623_s0 + $0x10] sm:$0xff]  ;;  %v31_v18 = vld [vmem:[%s623_s0 + $0x20] sm:$0xff]  ;;  %v34_v19 = vld [vmem:[%s623_s0 + $0x38] sm:$0xff]  ;;  %v243_v40 = vstv %s242_s21 }
  0x23   :  { %376 = vmatpush1.bf16.msra.mxu1 %v375_v46 }
  0x24   :  { %349 = vmatpush3.bf16.msra.mxu0 %v348_v47  ;;  %377 = vmatprep.subr.bf16.mxu1 %v407_v3  ;;  %v273_v47 = vstv %s291_s23 }
  0x25   :  { %351 = vmatprep.subr.bf16.mxu0 %v350_v51 }
  0x27   :  { %379 = vmatpush1.bf16.msra.mxu1 %v378_v57 }
  0x28   :  { %353 = vmatpush3.bf16.msra.mxu0 %v352_v58  ;;  %380 = vmatprep.subr.bf16.mxu1 %v407_v3 }
  0x29   :  { %355 = vmatprep.subr.bf16.mxu0 %v354_v60 }
  0x2b   :  { %382 = vmatpush1.bf16.msra.mxu1 %v381_v2 }
  0x2c   :  { %357 = vmatpush3.bf16.msra.mxu0 %v356_v4  ;;  %383 = vmatprep.subr.bf16.mxu1 %v407_v3 }
  0x2d   :  { %359 = vmatprep.subr.bf16.mxu0 %v358_v6 }
  0x2f   :  { %385 = vmatpush1.bf16.msra.mxu1 %v384_v10 }
  0x30   :  { %361 = vmatpush3.bf16.msra.mxu0 %v360_v11  ;;  %386 = vmatprep.subr.bf16.mxu1 %v407_v3  ;;  %v33_v3 = vld [vmem:[%s623_s0 + $0x30] sm:$0xff]  ;;  %s408_s0 = smov 127  }
  0x33   :  { %157 = vmatmul.mubr.f32.vlgmr.msra.gmra.mrb[0].mxu0 %v27_v14  ;;  %388 = vmatpush1.bf16.msra.mxu1 %v387_v15 }
  0x34   :  { %161 = vmatprep.mubr.f32.mxu0 %v32_v16 }
  0x36   :  { %232 = vmatmul.mubr.f32.vlgmr.msra.gmra.mrb[0].mxu1 %v29_v17 }
  0x37   :  { %162 = vmatmul.mubr.f32.gmra.mrb[2].mxu0 %v31_v18  ;;  %287 = vmatprep.mubr.msk.f32.mxu1 %vm85_vm0, %v34_v19 }
  0x3a   :  { %237 = vmatmul.mubr.f32.gmra.mrb[2].mxu1 %v33_v3 }
 0x106   :  { %v324_v20 = vpop.f32.mrb[0].mxu0 }
 0x107   :  { %v325_v21 = vpop.f32.mrb[1].mxu0 }
 0x108   :  { %v326_v22 = vadd.f32 %v325_v21, %v324_v20 }
 0x109   :  { %v233_v23 = vpop.f32.mrb[0].mxu1 }
 0x10a   :  { %v327_v25 = vpop.f32.mrb[2].mxu0  ;;  %v234_v26 = vadd.f32 %v326_v22, %v233_v23  ;;  %v235_v27 = vpop.f32.mrb[1].mxu1 }
 0x10b   :  { %v328_v28 = vpop.f32.mrb[3].mxu0 }
 0x10c   :  { %v329_v29 = vadd.f32 %v328_v28, %v327_v25  ;;  %v250_v30 = vadd.f32 %v249_v24, %v234_v26  ;;  %v244_v41 = vadd.f32 %v243_v40, %v234_v26 }
 0x10d   :  { %v238_v31 = vpop.f32.mrb[2].mxu1 }
 0x10e   :  { %v252_v33 = vmax.f32 %v250_v30, 0.0  ;;  %v239_v34 = vadd.f32 %v329_v29, %v238_v31  ;;  %v240_v35 = vpop.f32.mrb[3].mxu1  ;;  %v246_v42 = vmax.f32 %v244_v41, 0.0 }
 0x110   :  { %v251_v36 = vadd.f32 %v249_v24, %v239_v34  ;;  %v260_v37 = vmul.f32 %v259_v32, %v252_v33  ;;  %v245_v43 = vadd.f32 %v243_v40, %v239_v34  ;;  %v256_v46 = vmul.f32 %v255_v44, %v246_v42 }
 0x112   :  { %v253_v38 = vmax.f32 %v251_v36, 0.0  ;;  %264 = vrot.lane.b32.xlu0 %v260_v37, %s408_s0  ;;  %v247_v45 = vmax.f32 %v245_v43, 0.0 }
 0x114   :  { %v261_v39 = vmul.f32 %v259_v32, %v253_v38  ;;  %v257_v51 = vmul.f32 %v255_v44, %v247_v45 }
 0x116   :  { %266 = vrot.lane.b32.xlu0 %v261_v39, %s408_s0 }
 0x184   :  { %v265_v48 = vpop.permute.xlu0 %264 }
 0x185   :  { %v270_v49 = vadd.f32 %v265_v48, %v256_v46 }
 0x187   :  { %v274_v50 = vadd.f32 %v273_v47, %v270_v49 }
 0x188   :  { %v267_v52 = vpop.permute.xlu0 %266 }
 0x189   :  { %v276_v53 = vmax.f32 %v274_v50, 0.0  ;;  %v271_v54 = vadd.f32 %v267_v52, %v257_v51 }
 0x18b   :  { %279 = vst.msk [vmem:[%s626_s3] sm:$0xff] %vm278_vm1, %v276_v53  ;;  %v275_v55 = vadd.f32 %v273_v47, %v271_v54 }
 0x18d   :  { %v277_v56 = vmax.f32 %v275_v55, 0.0 }
 0x18f   :  { %280 = vst.msk [vmem:[%s626_s3 + $0x8] sm:$0xff] %vm278_vm1, %v277_v56 }
 0x190   :  { %285 = vsyncpa [#allocation3], 1 }

</bundles_post_ra>
